<compile_context>
chip_gen: v5e
topology: v5e:2x2
jax: 0.10.0
libtpu: 0.0.40
codegen_flags: <defaults>
</compile_context>

<pallas_src>
import functools

import jax
import jax.numpy as jnp
from jax.experimental import pallas as pl
from jax.experimental.pallas import tpu as pltpu


def _round_up(v, m):
    return (v + m - 1) // m * m


def _patch_embed_kernel(p_ref, w_ref, b_ref, o_ref):
    # p_ref: [tm, K] patches tile (bf16), w_ref: [K, tn] projection tile (bf16),
    # b_ref: [1, tn] bias (f32). MXU matmul with f32 accumulation; bias added in
    # f32; cast to the output dtype (matches Conv2d numerics closely).
    acc = jnp.dot(p_ref[...], w_ref[...], preferred_element_type=jnp.float32)
    o_ref[...] = (acc + b_ref[...]).astype(o_ref.dtype)


def patch_embed_forward(x, weight, bias, patch_size, stride, *,
                        tile_m=512, tile_n=256,
                        compute_dtype=jnp.bfloat16,
                        channels_last=False):
    """x: [B, C, H, W] (NCHW). weight: [embed_dim, C, ph, pw]. bias: [embed_dim].

    Returns [B, embed_dim, H//stride, W//stride] (same as nn.Conv2d with
    kernel_size=patch_size, stride=stride, padding=0), or [B, Ho, Wo, E] if
    channels_last=True."""
    assert patch_size == stride, "PatchEmbed default: non-overlapping patches"
    B, C, H, W = x.shape
    E = weight.shape[0]
    ph = pw = patch_size
    assert H % ph == 0 and W % pw == 0, (
        "H and W must be divisible by patch_size (avoid silent truncation)")
    Ho, Wo = H // ph, W // pw

    # --- glue: extract non-overlapping patches (pure reshapes/transposes) ---
    # TODO(synk): fuse the NCHW patch extraction into the kernel (BlockSpec over
    # (b, Ho)-tiles of x + in-VMEM relayout) to drop one full HBM read+write
    # pass; kept as XLA glue here for lowering robustness.
    patches = x.reshape(B, C, Ho, ph, Wo, pw).transpose(0, 2, 4, 1, 3, 5)
    patches = patches.reshape(B * Ho * Wo, C * ph * pw)
    w_mat = weight.reshape(E, C * ph * pw).T           # [K, E]

    M, K = patches.shape
    N = E

    # Pad M to a sublane multiple and N to a lane-dense (>=128) multiple so the
    # output tile's last dim is always a full-lane, unmasked store.
    M_pad = _round_up(max(M, 8), 8)
    tm = min(tile_m, M_pad)
    M_pad = _round_up(M_pad, tm)
    N_pad = _round_up(max(N, 128), 128)
    tn = min(tile_n, N_pad)
    N_pad = _round_up(N_pad, tn)

    patches_p = jnp.pad(patches, ((0, M_pad - M), (0, 0))).astype(compute_dtype)
    w_p = jnp.pad(w_mat, ((0, 0), (0, N_pad - N))).astype(compute_dtype)
    b_p = jnp.pad(bias.reshape(1, N), ((0, 0), (0, N_pad - N))).astype(jnp.float32)

    grid_m = M_pad // tm
    grid_n = N_pad // tn

    cbytes = jnp.dtype(compute_dtype).itemsize
    obytes = jnp.dtype(x.dtype).itemsize
    # Double-buffered inputs + output, with 2x headroom; stays well inside the
    # 32 MiB default scoped limit / v7x's 64 MiB physical VMEM at these tiles.
    vmem_need = (2 * (tm * K * cbytes + K * tn * cbytes + tm * tn * obytes)
                 + 2 * tn * 4)
    vmem_limit = int(min(100 * 1024 * 1024,
                         max(32 * 1024 * 1024, 2 * vmem_need)))

    cost = pl.CostEstimate(
        flops=2 * M_pad * K * N_pad,
        bytes_accessed=(M_pad * K * cbytes             # patches: read once (reused over j)
                        + grid_m * K * N_pad * cbytes  # weights: re-read per M tile
                        + N_pad * 4                    # bias
                        + M_pad * N_pad * obytes),     # output write
        transcendentals=0)

    out = pl.pallas_call(
        _patch_embed_kernel,
        out_shape=jax.ShapeDtypeStruct((M_pad, N_pad), x.dtype),
        # N is the inner (fastest) grid axis: the larger (tm, K) patches block
        # index is invariant across it, so Pallas skips its re-DMA and only
        # streams the (K, tn) weight / bias tiles each step.
        grid=(grid_m, grid_n),
        in_specs=[
            pl.BlockSpec((tm, K), lambda i, j: (i, 0)),
            pl.BlockSpec((K, tn), lambda i, j: (0, j)),
            pl.BlockSpec((1, tn), lambda i, j: (0, j)),
        ],
        out_specs=pl.BlockSpec((tm, tn), lambda i, j: (i, j)),
        compiler_params=pltpu.CompilerParams(
            dimension_semantics=("parallel", "parallel"),
            vmem_limit_bytes=vmem_limit),
        cost_estimate=cost,
    )(patches_p, w_p, b_p)

    out = out[:M, :N].reshape(B, Ho, Wo, E)
    if channels_last:
        return out                       # [B, Ho, Wo, E]  (skips NCHW transpose)
    # [B, Ho, Wo, E] -> [B, E, Ho, Wo]  (PyTorch Conv2d output layout)
    return out.transpose(0, 3, 1, 2)


if __name__ == "__main__":
    # Small shapes consistent with the module: patch_size=stride=4,
    # in_chans=4, embed_dim=32, spatial=16.
    B, C, H, W = 2, 4, 16, 16
    patch_size = stride = 4
    embed_dim = 32

    key = jax.random.PRNGKey(0)
    kx, kw, kb = jax.random.split(key, 3)
    x = jax.random.normal(kx, (B, C, H, W), dtype=jnp.float32)
    # Deterministic synthetic Conv2d parameters (shapes match nn.Conv2d).
    weight = jax.random.normal(
        kw, (embed_dim, C, patch_size, patch_size), dtype=jnp.float32) * 0.02
    bias = jax.random.normal(kb, (embed_dim,), dtype=jnp.float32) * 0.02

    fwd = jax.jit(functools.partial(
        patch_embed_forward, patch_size=patch_size, stride=stride))
    out = fwd(x, weight, bias)
    jax.block_until_ready(out)
    assert out.shape == (B, embed_dim, H // stride, W // stride)

    # Cross-check #1: bit-for-bit-matched reference (bf16 operands, f32 acc),
    # same rounding as the kernel -> tight tolerance.
    ref_bf16 = jax.lax.conv_general_dilated(
        x.astype(jnp.bfloat16), weight.astype(jnp.bfloat16),
        window_strides=(stride, stride), padding="VALID",
        dimension_numbers=("NCHW", "OIHW", "NCHW"),
        preferred_element_type=jnp.float32) + bias.reshape(1, -1, 1, 1)
    assert jnp.allclose(out, ref_bf16.astype(out.dtype), atol=1e-4, rtol=1e-4)

    # Cross-check #2: full-f32 XLA conv, loose tolerance (bf16 operand cast).
    ref_f32 = jax.lax.conv_general_dilated(
        x, weight, window_strides=(stride, stride), padding="VALID",
        dimension_numbers=("NCHW", "OIHW", "NCHW")) + bias.reshape(1, -1, 1, 1)
    assert jnp.allclose(out, ref_f32, atol=1e-2, rtol=1e-2)

    print("KERNEL_OK")
</pallas_src>

<mosaic_0001>
module attributes {stable_mosaic.version = 11 : i64} {
  func.func @_patch_embed_kernel(%arg0: i32, %arg1: i32, %arg2: memref<32x64xbf16, #tpu.memory_space<vmem>>, %arg3: memref<64x128xbf16, #tpu.memory_space<vmem>>, %arg4: memref<1x128xf32, #tpu.memory_space<vmem>>, %arg5: memref<32x128xf32, #tpu.memory_space<vmem>>) attributes {dimension_semantics = [#tpu.dimension_semantics<parallel>, #tpu.dimension_semantics<parallel>], iteration_bounds = array<i64: 1, 1>, scalar_prefetch = 0 : i64, scratch_operands = 0 : i64, tpu.core_type = #tpu.core_type<tc>, window_params = [{transform_indices = @transform_0, window_bounds = array<i64: 32, 64>}, {transform_indices = @transform_1, window_bounds = array<i64: 64, 128>}, {transform_indices = @transform_2, window_bounds = array<i64: 1, 128>}, {transform_indices = @transform_3, window_bounds = array<i64: 32, 128>}]} {
    %c0 = arith.constant 0 : index
    %c0_0 = arith.constant 0 : index
    %0 = vector.load %arg2[%c0, %c0_0] : memref<32x64xbf16, #tpu.memory_space<vmem>>, vector<32x64xbf16>
    %c0_1 = arith.constant 0 : index
    %c0_2 = arith.constant 0 : index
    %1 = vector.load %arg3[%c0_1, %c0_2] : memref<64x128xbf16, #tpu.memory_space<vmem>>, vector<64x128xbf16>
    %cst = arith.constant dense<0.000000e+00> : vector<32x128xf32>
    %2 = tpu.matmul %0, %1, %cst {dimension_numbers = #tpu.dot_dimension_numbers<[1], [0], [0], [1], [0, 0, 1, 1], [], []>} : vector<32x64xbf16>, vector<64x128xbf16>, vector<32x128xf32> -> vector<32x128xf32>
    %c0_3 = arith.constant 0 : index
    %c0_4 = arith.constant 0 : index
    %3 = vector.load %arg4[%c0_3, %c0_4] : memref<1x128xf32, #tpu.memory_space<vmem>>, vector<1x128xf32>
    %4 = vector.broadcast %3 : vector<1x128xf32> to vector<32x128xf32>
    %5 = arith.addf %2, %4 : vector<32x128xf32>
    %c0_5 = arith.constant 0 : index
    %c0_6 = arith.constant 0 : index
    %6 = vector.load %arg5[%c0_5, %c0_6] : memref<32x128xf32, #tpu.memory_space<vmem>>, vector<32x128xf32>
    tpu.vector_store %arg5[%c0_5, %c0_6], %5 {strides = array<i32>} : memref<32x128xf32, #tpu.memory_space<vmem>>, vector<32x128xf32>,
    return
  }
  func.func @transform_0(%arg0: i32, %arg1: i32) -> (i32, i32) {
    %c0_i32 = arith.constant 0 : i32
    %c0_i32_0 = arith.constant 0 : i32
    return %arg0, %c0_i32 : i32, i32
  }
  func.func @transform_1(%arg0: i32, %arg1: i32) -> (i32, i32) {
    %c0_i32 = arith.constant 0 : i32
    %c0_i32_0 = arith.constant 0 : i32
    return %c0_i32, %arg1 : i32, i32
  }
  func.func @transform_2(%arg0: i32, %arg1: i32) -> (i32, i32) {
    %c0_i32 = arith.constant 0 : i32
    %c0_i32_0 = arith.constant 0 : i32
    return %c0_i32, %arg1 : i32, i32
  }
  func.func @transform_3(%arg0: i32, %arg1: i32) -> (i32, i32) {
    %c0_i32 = arith.constant 0 : i32
    return %arg0, %arg1 : i32, i32
  }
}

</mosaic_0001>

<bundles_post_ra>
// kernel: patch_embed_forward.1
= control target key start
LH: loop header
LB: loop body
LE: loop exit
PB: predicated region body
PF: predicated region fallthrough
CT: control target
= control target key end

     0   :  { %s227_s0 = inlined_call_operand.vmem [shape: bf16[32,64], index: 0, kind: input, shape index: {}]   ;;  %s228_s1 = inlined_call_operand.vmem [shape: bf16[64,128], index: 1, kind: input, shape index: {}]   ;;  %s229_s2 = inlined_call_operand.vmem [shape: f32[1,128], index: 2, kind: input, shape index: {}]   ;;  %s230_s3 = inlined_call_operand.hbm [shape: f32[32,128], index: 3, kind: output, shape index: {}]  }
   0x1   :  { %v145_v0 = vld [vmem:[%s228_s1 + $0x18] sm:$0xff]  ;;  %v144_v1 = vld [vmem:[%s228_s1 + $0x10] sm:$0xff] }
   0x2   :  { %77 = vmatpush.bf16.msra.mxu0 %v145_v0  ;;  %146 = vmatpush.bf16.msra.mxu1 %v145_v0 }
   0x3   :  { %8 = vsyncpa [#allocation3], 0  ;;  %v143_v2 = vld [vmem:[%s228_s1 + $0x8] sm:$0xff]  ;;  %v142_v3 = vld [vmem:[%s228_s1] sm:$0xff]  ;;  %vm66_vm0 = vcmask 523264   ;;  %s180_s1 = smov [#allocation2]  }
   0x4   :  { %v140_v4 = vld [vmem:[%s227_s0] sm:$0xff]  ;;  %v141_v5 = vld [vmem:[%s227_s0 + $0x8] sm:$0xff]  ;;  %s100_s26 = sshll.u32 %s180_s1, 4  ;;  %s102_s0 = sshll.u32 %s230_s3, 4  ;;  %s101_s26 = int_to_ptr.vmem [resolvable:$true] %s100_s26  ;;  %s103_s0 = int_to_ptr.hbm [resolvable:$true] %s102_s0 }
   0x5   :  { %v153_v6 = vld [vmem:[%s229_s2] ss:$0 sm:$0xff]  ;;  %s181_s2 = smov 128   ;;  %s182_s29 = smov 8  }
   0x6   :  { %78 = vmatpush.bf16.msra.mxu0 %v144_v1  ;;  %147 = vmatpush.bf16.msra.mxu1 %v144_v1 }
   0xa   :  { %79 = vmatpush.bf16.msra.mxu0 %v143_v2  ;;  %148 = vmatpush.bf16.msra.mxu1 %v143_v2 }
   0xe   :  { %80 = vmatpush.bf16.msra.mxu0 %v142_v3  ;;  %149 = vmatpush.bf16.msra.mxu1 %v142_v3 }
  0x11   :  { %138 = vmatmul.msk.bf16.vlgmr.msra.gmra.mxu0 %vm66_vm0, %v140_v4  ;;  %139 = vmatmul.msk.bf16.vlgmr.msra.gmra.mxu1 %vm66_vm0, %v141_v5 }
  0x8e   :  { %v82_v7 = vpop.f32.mrf.mxu0  ;;  %v87_v8 = vpop.f32.mrf.mxu1 }
  0x8f   :  { %v83_v9 = vadd.f32 %v153_v6, %v82_v7  ;;  %v88_v10 = vadd.f32 %v153_v6, %v87_v8 }
  0x91   :  { %92 = vst [vmem:[#allocation2] sm:$0xff] %v83_v9 }
  0x92   :  { %94 = vst [vmem:[#allocation2 + $0x10] sm:$0xff] %v88_v10 }
  0x96   :  { %v84_v11 = vpop.f32.mrf.mxu0  ;;  %v89_v12 = vpop.f32.mrf.mxu1 }
  0x97   :  { %v85_v13 = vadd.f32 %v153_v6, %v84_v11  ;;  %v90_v14 = vadd.f32 %v153_v6, %v89_v12 }
  0x99   :  { %93 = vst [vmem:[#allocation2 + $0x8] sm:$0xff] %v85_v13 }
  0x9a   :  { %95 = vst [vmem:[#allocation2 + $0x18] sm:$0xff] %v90_v14 }
  0x9b   :  { %108 = dma.vmem_to_hbm [thread:$0]  %s101_s26, 512, %s103_s0, [#allocation3], %s181_s2, %s181_s2, %s182_s29  }
  0x9c   :  { %178 = dma.done.wait [#allocation3], 512  }
  0x9d   :  { %179 = vsyncadd [#allocation3], 4294966784 }
  0x9e   :  { %113 = vsyncpa [#allocation3], 1 }

</bundles_post_ra>
